<compile_context>
chip_gen: v7x
topology: tpu7x:2x2x1
jax: 0.10.0
libtpu: 0.0.40
codegen_flags: <defaults>
</compile_context>

<pallas_src>
import jax
import jax.numpy as jnp
from jax.experimental import pallas as pl
from jax.experimental.pallas import tpu as pltpu


def _disc_kernel(bias_ref, v_ref, hpl_ref, hmi_ref, out_ref):
    """bias_ref: (1,) SMEM; v_ref: (B,1,H); hpl_ref/hmi_ref: (B,TILE_N,H);
    out_ref: (B,2,TILE_N)."""
    bias = bias_ref[0]                                       # scalar (SMEM)
    v = v_ref[...]                                           # (B, 1, H), resident

    # Batched mat-vec on the MXU: contract H, batch over B -> (B, 1, TILE_N).
    # Output is lane-dense along TILE_N.
    dnums = (((2,), (2,)), ((0,), (0,)))
    s1 = jax.lax.dot_general(v, hpl_ref[...], dnums,
                             preferred_element_type=jnp.float32)
    s2 = jax.lax.dot_general(v, hmi_ref[...], dnums,
                             preferred_element_type=jnp.float32)

    # Two lane-dense slice stores; no concatenate / sublane shuffle.
    out_ref[:, 0:1, :] = (s1 + bias).astype(out_ref.dtype)
    out_ref[:, 1:2, :] = (s2 + bias).astype(out_ref.dtype)


def _round_up(x, m):
    return ((x + m - 1) // m) * m


def _vmem_capacity_bytes():
    """Physical VMEM of the current generation (128 MiB v5e/v6e, 64 MiB/TC v7x)."""
    try:
        info = pltpu.get_tpu_info()
        cap = getattr(info, "vmem_capacity_bytes", None)
        if cap:
            return int(cap)
    except Exception:
        pass
    return 64 * 1024 * 1024  # conservative fallback (v7x per-TC size)


def _pick_tile_n(N, B, H, itemsize, budget):
    """Largest lane-dense (multiple-of-128) node tile whose double-buffered
    h_pl/h_mi streams fit `budget` bytes of VMEM, while guaranteeing at least
    two grid steps (so the 'parallel' axis can split across TensorCores)."""
    if N <= 128:
        return N                                   # single full-extent tile
    h_lanes = max(128, _round_up(H, 128))          # lane-padded block width
    per_row = 2 * 2 * B * h_lanes * itemsize       # 2 streams x 2 buffers x B rows
    tile = (budget // max(per_row, 1)) // 128 * 128
    tile = max(128, min(tile, 8192))
    # Cap so the grid has >= 2 steps (v7x 2 TCs / megacore get work).
    half = _round_up(pl.cdiv(N, 2), 128)
    return int(min(tile, half))


def discriminator_forward(c, h_pl, h_mi, W, bias,
                          s_bias1=None, s_bias2=None, tile_n=None):
    """c: (B,H); h_pl, h_mi: (B,N,H); W: (H,H) == bilinear weight[0]; bias: (1,).
    Returns logits (B, 2N)."""
    B, N, H = h_pl.shape
    assert c.shape == (B, H) and h_mi.shape == (B, N, H) and W.shape == (H, H)

    out_dtype = h_pl.dtype
    itemsize = jnp.dtype(h_pl.dtype).itemsize

    cap = _vmem_capacity_bytes()
    vmem_limit = int(min(cap * 3 // 4, 96 * 1024 * 1024))
    stream_budget = int(min(cap * 3 // 8, 48 * 1024 * 1024))

    if tile_n is None:
        tile_n = _pick_tile_n(N, B, H, itemsize, stream_budget)
    n_tiles = pl.cdiv(N, tile_n)

    # Hoisted bilinear precompute: v[b, i] = sum_j W[i, j] * c[b, j].
    # One tiny (B,H)x(H,H) einsum in the wrapper; passed resident as (B,1,H).
    v = jnp.einsum('ij,bj->bi', W, c).astype(h_pl.dtype).reshape(B, 1, H)
    bias_f32 = bias.astype(jnp.float32)

    # TODO(synk): for H < 128, pack k=128//H nodes per lane row (block-diagonal
    # LHS trick) to make the streamed blocks fully lane-dense; the kernel is
    # HBM-bound either way since the DMA only moves the real (unpadded) bytes.

    cost = pl.CostEstimate(
        flops=2 * (2 * B * N * H),
        transcendentals=0,
        bytes_accessed=(2 * B * N * H + B * H) * itemsize
        + 2 * B * N * itemsize,
    )

    out = pl.pallas_call(
        _disc_kernel,
        out_shape=jax.ShapeDtypeStruct((B, 2, N), out_dtype),
        grid=(n_tiles,),
        in_specs=[
            pl.BlockSpec(memory_space=pltpu.SMEM),               # bias scalar
            pl.BlockSpec((B, 1, H), lambda i: (0, 0, 0)),        # v (resident)
            pl.BlockSpec((B, tile_n, H), lambda i: (0, i, 0)),   # h_pl tile
            pl.BlockSpec((B, tile_n, H), lambda i: (0, i, 0)),   # h_mi tile
        ],
        out_specs=pl.BlockSpec((B, 2, tile_n), lambda i: (0, 0, i)),
        compiler_params=pltpu.CompilerParams(
            dimension_semantics=("parallel",),
            vmem_limit_bytes=vmem_limit,
        ),
        cost_estimate=cost,
    )(bias_f32, v, h_pl, h_mi)

    if s_bias1 is None and s_bias2 is None:
        # (B, 2, N) row-major -> (B, 2N)  ==  torch.cat((sc_1, sc_2), dim=1)
        return out.reshape(B, 2 * N)
    sc1 = out[:, 0, :]
    sc2 = out[:, 1, :]
    if s_bias1 is not None:
        sc1 = sc1 + s_bias1
    if s_bias2 is not None:
        sc2 = sc2 + s_bias2
    return jnp.concatenate([sc1, sc2], axis=1)


def discriminator_reference(c, h_pl, h_mi, W, bias, s_bias1=None, s_bias2=None):
    v = jnp.einsum('ij,bj->bi', W, c)                         # (B, H)
    sc1 = jnp.einsum('bnh,bh->bn', h_pl, v) + bias[0]
    sc2 = jnp.einsum('bnh,bh->bn', h_mi, v) + bias[0]
    if s_bias1 is not None:
        sc1 = sc1 + s_bias1
    if s_bias2 is not None:
        sc2 = sc2 + s_bias2
    return jnp.concatenate([sc1, sc2], axis=1)


if __name__ == "__main__":
    key = jax.random.PRNGKey(0)
    k1, k2, k3, kw, k5, k6, k7 = jax.random.split(key, 7)

    # nn.Bilinear(n_h, n_h, 1): xavier_uniform weight (1, n_h, n_h), zero bias.
    n_h = 32
    fan_in, fan_out = n_h * n_h, 1 * n_h
    bound = (6.0 / (fan_in + fan_out)) ** 0.5
    W = jax.random.uniform(kw, (n_h, n_h), dtype=jnp.float32,
                           minval=-bound, maxval=bound)       # == weight[0]
    bias = jnp.zeros((1,), dtype=jnp.float32)

    # Case 1: small shapes implied by the module (batch=1, nodes=8, hidden=32).
    B, N = 1, 8
    c = jax.random.normal(k1, (B, n_h), dtype=jnp.float32)
    h_pl = jax.random.normal(k2, (B, N, n_h), dtype=jnp.float32)
    h_mi = jax.random.normal(k3, (B, N, n_h), dtype=jnp.float32)

    logits = discriminator_forward(c, h_pl, h_mi, W, bias)
    jax.block_until_ready(logits)
    ref = discriminator_reference(c, h_pl, h_mi, W, bias)
    assert logits.shape == (B, 2 * N), logits.shape
    assert jnp.allclose(logits, ref, atol=1e-4, rtol=1e-4)

    # Case 2: exercises the N-tiled, lane-dense, >=2-step parallel-grid path
    # (auto tile picker forces at least two tiles for N > 128).
    B2, N2 = 2, 256
    c2 = jax.random.normal(k5, (B2, n_h), dtype=jnp.float32)
    h2p = jax.random.normal(k6, (B2, N2, n_h), dtype=jnp.float32)
    h2m = jax.random.normal(k7, (B2, N2, n_h), dtype=jnp.float32)

    logits2 = discriminator_forward(c2, h2p, h2m, W, bias)     # auto tile_n
    jax.block_until_ready(logits2)
    ref2 = discriminator_reference(c2, h2p, h2m, W, bias)
    assert logits2.shape == (B2, 2 * N2), logits2.shape
    assert jnp.allclose(logits2, ref2, atol=1e-4, rtol=1e-4)

    # Same shapes with an explicitly forced tile to exercise the partial-block
    # independent path and the optional s_bias inputs.
    sb1 = jax.random.normal(k1, (B2, N2), dtype=jnp.float32)
    sb2 = jax.random.normal(k2, (B2, N2), dtype=jnp.float32)
    logits3 = discriminator_forward(c2, h2p, h2m, W, bias, sb1, sb2, tile_n=128)
    jax.block_until_ready(logits3)
    ref3 = discriminator_reference(c2, h2p, h2m, W, bias, sb1, sb2)
    assert jnp.allclose(logits3, ref3, atol=1e-4, rtol=1e-4)

    print("KERNEL_OK")
</pallas_src>

<mosaic_0001>
module attributes {stable_mosaic.version = 11 : i64} {
  func.func @_disc_kernel(%arg0: i32, %arg1: memref<1xf32, #tpu.memory_space<smem>>, %arg2: memref<1x1x32xf32, #tpu.memory_space<vmem>>, %arg3: memref<1x8x32xf32, #tpu.memory_space<vmem>>, %arg4: memref<1x8x32xf32, #tpu.memory_space<vmem>>, %arg5: memref<1x2x8xf32, #tpu.memory_space<vmem>>) attributes {dimension_semantics = [#tpu.dimension_semantics<parallel>], iteration_bounds = array<i64: 1>, scalar_prefetch = 0 : i64, scratch_operands = 0 : i64, tpu.core_type = #tpu.core_type<tc>, window_params = [{transform_indices = @transform_0, window_bounds = array<i64: 1>}, {pipeline_mode = #tpu.pipeline_mode<synchronous>, transform_indices = @transform_1, window_bounds = array<i64: 1, 1, 32>}, {transform_indices = @transform_2, window_bounds = array<i64: 1, 8, 32>}, {transform_indices = @transform_3, window_bounds = array<i64: 1, 8, 32>}, {transform_indices = @transform_4, window_bounds = array<i64: 1, 2, 8>}]} {
    %c0 = arith.constant 0 : index
    %0 = memref.load %arg1[%c0] : memref<1xf32, #tpu.memory_space<smem>>
    %c0_0 = arith.constant 0 : index
    %c0_1 = arith.constant 0 : index
    %c0_2 = arith.constant 0 : index
    %1 = vector.load %arg2[%c0_0, %c0_1, %c0_2] : memref<1x1x32xf32, #tpu.memory_space<vmem>>, vector<1x1x32xf32>
    %c0_3 = arith.constant 0 : index
    %c0_4 = arith.constant 0 : index
    %c0_5 = arith.constant 0 : index
    %2 = vector.load %arg3[%c0_3, %c0_4, %c0_5] : memref<1x8x32xf32, #tpu.memory_space<vmem>>, vector<1x8x32xf32>
    %cst = arith.constant dense<0.000000e+00> : vector<1x1x8xf32>
    %3 = tpu.matmul %1, %2, %cst {dimension_numbers = #tpu.dot_dimension_numbers<[2], [2], [1], [1], [0, 0, 0, 1, 1, 1], [0], [0]>} : vector<1x1x32xf32>, vector<1x8x32xf32>, vector<1x1x8xf32> -> vector<1x1x8xf32>
    %c0_6 = arith.constant 0 : index
    %c0_7 = arith.constant 0 : index
    %c0_8 = arith.constant 0 : index
    %4 = vector.load %arg4[%c0_6, %c0_7, %c0_8] : memref<1x8x32xf32, #tpu.memory_space<vmem>>, vector<1x8x32xf32>
    %cst_9 = arith.constant dense<0.000000e+00> : vector<1x1x8xf32>
    %5 = tpu.matmul %1, %4, %cst_9 {dimension_numbers = #tpu.dot_dimension_numbers<[2], [2], [1], [1], [0, 0, 0, 1, 1, 1], [0], [0]>} : vector<1x1x32xf32>, vector<1x8x32xf32>, vector<1x1x8xf32> -> vector<1x1x8xf32>
    %6 = vector.broadcast %0 : f32 to vector<1x1x8xf32>
    %7 = arith.addf %3, %6 : vector<1x1x8xf32>
    %c0_10 = arith.constant 0 : index
    %c0_11 = arith.constant 0 : index
    %c0_12 = arith.constant 0 : index
    %8 = vector.load %arg5[%c0_10, %c0_11, %c0_12] : memref<1x2x8xf32, #tpu.memory_space<vmem>>, vector<1x1x8xf32>
    tpu.vector_store %arg5[%c0_10, %c0_11, %c0_12], %7 {strides = array<i32>} : memref<1x2x8xf32, #tpu.memory_space<vmem>>, vector<1x1x8xf32>,
    %9 = vector.broadcast %0 : f32 to vector<1x1x8xf32>
    %10 = arith.addf %5, %9 : vector<1x1x8xf32>
    %c0_13 = arith.constant 0 : index
    %c1 = arith.constant 1 : index
    %c0_14 = arith.constant 0 : index
    %11 = vector.load %arg5[%c0_13, %c1, %c0_14] : memref<1x2x8xf32, #tpu.memory_space<vmem>>, vector<1x1x8xf32>
    tpu.vector_store %arg5[%c0_13, %c1, %c0_14], %10 {strides = array<i32>} : memref<1x2x8xf32, #tpu.memory_space<vmem>>, vector<1x1x8xf32>,
    return
  }
  func.func @transform_0(%arg0: i32) -> i32 {
    %c0_i32 = arith.constant 0 : i32
    %c0_i32_0 = arith.constant 0 : i32
    return %c0_i32 : i32
  }
  func.func @transform_1(%arg0: i32) -> (i32, i32, i32) {
    %c0_i32 = arith.constant 0 : i32
    %c0_i32_0 = arith.constant 0 : i32
    %c0_i32_1 = arith.constant 0 : i32
    %c0_i32_2 = arith.constant 0 : i32
    return %c0_i32, %c0_i32_0, %c0_i32_1 : i32, i32, i32
  }
  func.func @transform_2(%arg0: i32) -> (i32, i32, i32) {
    %c0_i32 = arith.constant 0 : i32
    %c0_i32_0 = arith.constant 0 : i32
    %c0_i32_1 = arith.constant 0 : i32
    return %c0_i32, %arg0, %c0_i32_0 : i32, i32, i32
  }
  func.func @transform_3(%arg0: i32) -> (i32, i32, i32) {
    %c0_i32 = arith.constant 0 : i32
    %c0_i32_0 = arith.constant 0 : i32
    %c0_i32_1 = arith.constant 0 : i32
    return %c0_i32, %arg0, %c0_i32_0 : i32, i32, i32
  }
  func.func @transform_4(%arg0: i32) -> (i32, i32, i32) {
    %c0_i32 = arith.constant 0 : i32
    %c0_i32_0 = arith.constant 0 : i32
    %c0_i32_1 = arith.constant 0 : i32
    return %c0_i32, %c0_i32_0, %arg0 : i32, i32, i32
  }
}

</mosaic_0001>

<bundles_post_ra>
// kernel: tpu_custom_call.1
= control target key start
LH: loop header
LB: loop body
LE: loop exit
PB: predicated region body
PF: predicated region fallthrough
CT: control target
= control target key end

     0   :  { %10 = vsyncpa [#allocation4], 0  ;;  %s336_s0 = inlined_call_operand.<no memory space> [shape: f32[1], index: 0, kind: input, shape index: {}]   ;;  %s337_s1 = inlined_call_operand.vmem [shape: f32[1,1,32], index: 1, kind: input, shape index: {}]   ;;  %s338_s2 = inlined_call_operand.hbm [shape: f32[1,8,32], index: 2, kind: input, shape index: {}]   ;;  %s339_s3 = inlined_call_operand.vmem [shape: f32[1,8,32], index: 3, kind: input, shape index: {}]   ;;  %s340_s4 = inlined_call_operand.hbm [shape: f32[1,2,8], index: 4, kind: output, shape index: {}]  }
   0x1   :  { %11 = vsyncpa [#allocation5], 0  ;;  %s274_s15 = smov [#allocation3]   ;;  %s226_s19 = scalar_lea.hbm %s338_s2, 128 }
   0x2   :  { %s22_s16 = sshll.u32 %s274_s15, 4  ;;  %p227_p0 = scmp.ne.s32.totalorder %s338_s2, %s226_s19  ;;  %s23_s16 = int_to_ptr.vmem [resolvable:$true] %s22_s16 }
   0x3   :  { %p230_p1 = scmp.lt.u32.totalorder %s226_s19, %s338_s2 }
   0x5   :  { %p232_p2 = pnand %p230_p1, %p227_p0 }
   0x7   :  { %235 = shalt.err (!%p232_p2)
}
   0x8   :  { %s236_s24 = scalar_lea.vmem %s23_s16, 128  ;;  %p241_p4 = scmp.lt.s32.totalorder %s23_s16, %s23_s16 }
   0x9   :  { %p237_p3 = scmp.ne.s32.totalorder %s23_s16, %s236_s24  ;;  %p242_p5 = scmp.lt.s32.totalorder %s236_s24, %s236_s24 }
   0xb   :  { %p243_p6 = por %p242_p5, %p241_p4 }
   0xd   :  { %p244_p7 = pnand %p243_p6, %p237_p3 }
   0xf   :  { %247 = shalt.err (!%p244_p7)
}
  0x10   :  { %25 = dma.hbm_to_vmem [thread:$0]  %s338_s2, 128, %s23_s16, [#allocation4]  }
  0x11   :  { %270 = dma.done.wait [#allocation4], 128  }
  0x12   :  { %271 = vsyncadd [#allocation4], 4294967168  ;;  %v275_v0 = vmov 0.0   ;;  %vm276_vm0 = vmmov 0   ;;  %vm36_vm1 = vcmask 261120   ;;  %v33_v1 = vld [vmem:[#allocation3] sm:$0xff]  ;;  %v35_v4 = vstv %s336_s0 }
  0x13   :  { %212 = vmatprep.subr.mxu0 %v275_v0  ;;  %217 = vmatprep.subr.mxu1 %v275_v0  ;;  %v34_v2 = vld [vmem:[%s339_s3] sm:$0xff]  ;;  %s277_s6 = smov [#allocation6]   ;;  %vm113_vm2 = vcmask 57344  }
  0x14   :  { %214 = vmatprep.mubr.msk.f32.mxu0 %vm276_vm0, %v275_v0  ;;  %219 = vmatprep.mubr.msk.f32.mxu1 %vm276_vm0, %v275_v0  ;;  %v32_v3 = vld [vmem:[%s337_s1] sm:$0x1]  ;;  %s195_s7 = sshll.u32 %s277_s6, 4  ;;  %s196_s7 = int_to_ptr.vmem [resolvable:$true] %s195_s7 }
  0x15   :  { %213 = vmatpush3.xpose.msk.msra.mxu0 %vm36_vm1, %v33_v1  ;;  %218 = vmatpush3.xpose.msk.msra.mxu1 %vm36_vm1, %v34_v2  ;;  %s248_s3 = scalar_lea.vmem %s196_s7, 32  ;;  %p253_p9 = scmp.lt.s32.totalorder %s196_s7, %s196_s7 }
  0x16   :  { %p249_p8 = scmp.ne.s32.totalorder %s196_s7, %s248_s3  ;;  %p254_p10 = scmp.lt.s32.totalorder %s248_s3, %s248_s3 }
  0x18   :  { %215 = vmatmul.mubr.msk.f32.vlgmr.msra.gmra.mrb[0].mxu0 %vm36_vm1, %v32_v3  ;;  %220 = vmatmul.mubr.msk.f32.vlgmr.msra.gmra.mrb[0].mxu1 %vm36_vm1, %v32_v3  ;;  %p255_p11 = por %p254_p10, %p253_p9 }
  0x1a   :  { %p256_p12 = pnand %p255_p11, %p249_p8 }
  0xeb   :  { %v109_v5 = vpop.f32.mrb[0].mxu0  ;;  %v184_v6 = vpop.f32.mrb[0].mxu1 }
  0xec   :  { %v110_v7 = vadd.f32 %v109_v5, %v35_v4  ;;  %v185_v8 = vadd.f32 %v184_v6, %v35_v4  ;;  %v216_v9 = vpop.f32.mrb[1].mxu0  ;;  %v221_v10 = vpop.f32.mrb[1].mxu1 }
  0xee   :  { %114 = vst.msk [vmem:[#allocation6] sm:$0x1] %vm113_vm2, %v110_v7  ;;  %188 = vst.msk [vmem:[#allocation6 + $0x1] sm:$0x1] %vm113_vm2, %v185_v8 }
  0xef   :  { %259 = shalt.err (!%p256_p12)
}
  0xf0   :  { %s260_s8 = scalar_lea.hbm %s340_s4, 32 }
  0xf1   :  { %p261_p13 = scmp.ne.s32.totalorder %s340_s4, %s260_s8  ;;  %p264_p0 = scmp.lt.u32.totalorder %s260_s8, %s340_s4 }
  0xf3   :  { %p266_p1 = pnand %p264_p0, %p261_p13 }
  0xf5   :  { %269 = shalt.err (!%p266_p1)
}
  0xf6   :  { %198 = dma.vmem_to_hbm [thread:$0]  %s196_s7, 32, %s340_s4, [#allocation5]  }
  0xf7   :  { %272 = dma.done.wait [#allocation5], 32  }
  0xf8   :  { %273 = vsyncadd [#allocation5], 4294967264 }
  0xf9   :  { %202 = vsyncpa [#allocation4], 1 }
  0xfa   :  { %203 = vsyncpa [#allocation5], 1 }

</bundles_post_ra>
